<compile_context>
chip_gen: v7x
topology: tpu7x:2x2x1
jax: 0.10.0
libtpu: 0.0.40
codegen_flags: <defaults>
</compile_context>

<pallas_src>
import math
import numpy as np
import jax
import jax.numpy as jnp
from jax.experimental import pallas as pl
from jax.experimental.pallas import tpu as pltpu

D = 32
C = 32
NEG_SLOPE = 0.01   # torch.nn.LeakyReLU default
BN_EPS = 1e-5      # torch.nn.BatchNorm1d default

# bf16 stage matrices: native MXU dtype on v5e/v6e/v7x.  BN stats & normalization
# remain f32, so the end-to-end error stays well inside the 3e-2 tolerance.
MATMUL_DTYPE = jnp.bfloat16


# ----------------------------- kernel -------------------------------------

def _stage(h, m_ref, b_ref, g_ref, be_ref, inv_cnt):
    """Folded (Conv1d k=3 pad=1 + AvgPool1d(2)) matmul + LeakyReLU + BatchNorm1d.

    h:      (N, Lin*Cin)   lane-dense activation (f32)
    m_ref:  (Lin*Cin, Lout*C)  folded conv+pool matrix (bf16)
    b_ref:  (1, Lout*C)    conv bias, pre-tiled over L
    g_ref:  (1, Lout*C)    BN gamma, pre-tiled over L
    be_ref: (1, Lout*C)    BN beta,  pre-tiled over L
    """
    m = m_ref[...]
    acc = jnp.dot(h.astype(m.dtype), m,
                  preferred_element_type=jnp.float32)            # (N, Lout*C) f32
    acc = acc + b_ref[...]                                       # bias (pool-invariant)
    acc = jnp.maximum(acc, NEG_SLOPE * acc)                      # LeakyReLU (mul+max)

    # BatchNorm1d (training-mode batch stats per channel over (N, L)), one pass.
    sums = jnp.sum(acc, axis=0, keepdims=True)                   # (1, Lout*C)
    sqs = jnp.sum(acc * acc, axis=0, keepdims=True)              # (1, Lout*C)
    stats = jnp.concatenate([sums, sqs], axis=0)                 # (2, Lout*C)
    # Lane roll-and-add butterfly: reduces over the L positions of each channel
    # AND leaves the per-channel result replicated across every lane (no tiny
    # MXU matmuls, no tile-back needed).  XLU work only.
    lc = stats.shape[-1]
    shift = C
    while shift < lc:
        stats = stats + pltpu.roll(stats, shift, 1)
        shift *= 2
    mean = stats[0:1] * inv_cnt                                  # (1, Lout*C) per-channel
    ex2 = stats[1:2] * inv_cnt
    var = ex2 - mean * mean                                      # biased var (matches torch)
    scale = g_ref[...] * jax.lax.rsqrt(var + BN_EPS)
    shift_b = be_ref[...] - mean * scale
    return acc * scale + shift_b                                 # (N, Lout*C)


def model_kernel(x_ref,
                 m1_ref, b1_ref, g1_ref, be1_ref,
                 m2_ref, b2_ref, g2_ref, be2_ref,
                 m3_ref, b3_ref, g3_ref, be3_ref,
                 w4_ref, b4_ref,
                 out_ref):
    n = x_ref.shape[0]
    h = x_ref[...]                                               # (N, 32)  L=32, Cin=1
    h = _stage(h, m1_ref, b1_ref, g1_ref, be1_ref, 1.0 / (n * 16))   # (N, 512)
    h = _stage(h, m2_ref, b2_ref, g2_ref, be2_ref, 1.0 / (n * 8))    # (N, 256)
    h = _stage(h, m3_ref, b3_ref, g3_ref, be3_ref, 1.0 / (n * 4))    # (N, 128)
    # Final Conv1d(32, 1, kernel_size=4) on L=4: broadcast-multiply + lane reduce
    # (VPU + XLU) instead of an almost-empty (N,128)@(128,1) MXU matvec.
    r = jnp.sum(h * w4_ref[...], axis=-1, keepdims=True)        # (N, 1)
    out_ref[...] = r + b4_ref[...]
    # TODO(synk): when the batch axis is gridded, present a lane-dense output
    # slab instead of a 1-lane-wide store.


# --------------------------- host-side glue --------------------------------

def _pool_shift_matrices(lin, ksize, pad):
    """A_k = AvgPool(2) composed with conv shift k (zero-padded boundaries)."""
    lout = lin // 2
    a = np.zeros((ksize, lout, lin), np.float32)
    for k in range(ksize):
        for m in range(lout):
            for lc in (2 * m, 2 * m + 1):        # the two conv outputs averaged
                src = lc + k - pad               # input index used by tap k
                if 0 <= src < lin:
                    a[k, m, src] += 0.5
    return a


def _fold_stage_matrix(w_torch, lin, pad=1):
    """Fold conv taps + pool∘shift into one (Lin*Cin, Lout*Cout) matrix."""
    cout, cin, ksize = w_torch.shape
    lout = lin // 2
    a = _pool_shift_matrices(lin, ksize, pad)                 # (K, Lout, Lin)
    wk = np.transpose(np.asarray(w_torch), (2, 1, 0))         # (K, Cin, Cout)
    m = np.einsum('kml,kco->lcmo', a, wk)                     # (Lin, Cin, Lout, Cout)
    return m.reshape(lin * cin, lout * cout)


def make_params(key):
    """Deterministic init (PyTorch-default-style uniform bounds), torch layouts."""
    tp = {}

    def conv_init(k, cout, cin, ksize):
        bound = 1.0 / math.sqrt(cin * ksize)
        kw, kb = jax.random.split(k)
        w = jax.random.uniform(kw, (cout, cin, ksize), jnp.float32, -bound, bound)
        b = jax.random.uniform(kb, (cout,), jnp.float32, -bound, bound)
        return w, b

    keys = jax.random.split(key, 4)
    tp['w1'], tp['b1'] = conv_init(keys[0], 32, 1, 3)
    tp['w2'], tp['b2'] = conv_init(keys[1], 32, 32, 3)
    tp['w3'], tp['b3'] = conv_init(keys[2], 32, 32, 3)
    tp['w4'], tp['b4'] = conv_init(keys[3], 1, 32, 4)
    for i in (1, 2, 3):                          # BatchNorm affine defaults
        tp[f'g{i}'] = jnp.ones((32,), jnp.float32)
        tp[f'be{i}'] = jnp.zeros((32,), jnp.float32)
    return tp


def kernel_params(tp, matmul_dtype=MATMUL_DTYPE):
    """Torch-layout params -> folded stage matrices + pre-tiled vectors."""
    flat = []
    for i, lin in zip((1, 2, 3), (32, 16, 8)):
        lout = lin // 2
        m = _fold_stage_matrix(np.asarray(tp[f'w{i}']), lin)            # (Lin*Cin, Lout*C)
        flat.append(jnp.asarray(m, matmul_dtype))
        flat.append(jnp.tile(tp[f'b{i}'].reshape(1, C), (1, lout)))     # (1, Lout*C)
        flat.append(jnp.tile(tp[f'g{i}'].reshape(1, C), (1, lout)))     # (1, Lout*C)
        flat.append(jnp.tile(tp[f'be{i}'].reshape(1, C), (1, lout)))    # (1, Lout*C)
    # Conv1d(32,1,4) weights flattened to (1, L*C) matching the (l*32+c) layout.
    w4row = np.transpose(np.asarray(tp['w4'])[0], (1, 0)).reshape(1, -1)  # (1, 128)
    flat.append(jnp.asarray(w4row, jnp.float32))
    flat.append(tp['b4'].reshape(1, 1))
    return tuple(flat)


@jax.jit
def model_forward(x, kp):
    n = x.shape[0]
    x2d = x.astype(jnp.float32)              # (N, 32): L on the lane axis, Cin=1 folded away
    vspec = pl.BlockSpec(memory_space=pltpu.MemorySpace.VMEM)
    out = pl.pallas_call(
        model_kernel,
        out_shape=jax.ShapeDtypeStruct((n, 1), jnp.float32),
        in_specs=[vspec] * (1 + len(kp)),
        out_specs=vspec,
        compiler_params=pltpu.CompilerParams(vmem_limit_bytes=32 * 1024 * 1024),
    )(x2d, *kp)
    return out.reshape(n)


# ----------------------- pure-JAX reference (for checking) -----------------

def ref_forward(x, tp):
    h = x[:, None, :]                                          # NCL
    for i in (1, 2, 3):
        h = jax.lax.conv_general_dilated(h, tp[f'w{i}'], (1,), [(1, 1)],
                                         dimension_numbers=('NCH', 'OIH', 'NCH'))
        h = h + tp[f'b{i}'][None, :, None]
        n_, c_, l_ = h.shape
        h = h.reshape(n_, c_, l_ // 2, 2).mean(axis=-1)        # AvgPool1d(2)
        h = jnp.where(h > 0, h, NEG_SLOPE * h)                 # LeakyReLU
        mean = h.mean(axis=(0, 2), keepdims=True)
        var = ((h - mean) ** 2).mean(axis=(0, 2), keepdims=True)
        h = (h - mean) / jnp.sqrt(var + BN_EPS)
        h = h * tp[f'g{i}'][None, :, None] + tp[f'be{i}'][None, :, None]
    h = jax.lax.conv_general_dilated(h, tp['w4'], (1,), 'VALID',
                                     dimension_numbers=('NCH', 'OIH', 'NCH'))
    h = h + tp['b4'][None, :, None]
    return h.reshape(-1)


# TODO(synk): BatchNorm running-statistics update (training-time side effect)
# is not reproduced; only the forward output is.

if __name__ == "__main__":
    key = jax.random.PRNGKey(0)
    kx, kparam = jax.random.split(key)
    N = 8
    x = jax.random.normal(kx, (N, D), jnp.float32)
    tp = make_params(kparam)
    kp = kernel_params(tp)

    out = model_forward(x, kp)
    jax.block_until_ready(out)

    ref = ref_forward(x, tp)
    tol = 1e-3 if MATMUL_DTYPE == jnp.float32 else 3e-2
    if not bool(jnp.allclose(out, ref, atol=tol, rtol=tol)):
        raise AssertionError(f"mismatch:\n pallas={out}\n ref   ={ref}")
    print("KERNEL_OK")
</pallas_src>

<mosaic_0001>
module attributes {stable_mosaic.version = 11 : i64} {
  func.func @model_kernel(%arg0: memref<8x32xf32, #tpu.memory_space<vmem>>, %arg1: memref<32x512xbf16, #tpu.memory_space<vmem>>, %arg2: memref<1x512xf32, #tpu.memory_space<vmem>>, %arg3: memref<1x512xf32, #tpu.memory_space<vmem>>, %arg4: memref<1x512xf32, #tpu.memory_space<vmem>>, %arg5: memref<512x256xbf16, #tpu.memory_space<vmem>>, %arg6: memref<1x256xf32, #tpu.memory_space<vmem>>, %arg7: memref<1x256xf32, #tpu.memory_space<vmem>>, %arg8: memref<1x256xf32, #tpu.memory_space<vmem>>, %arg9: memref<256x128xbf16, #tpu.memory_space<vmem>>, %arg10: memref<1x128xf32, #tpu.memory_space<vmem>>, %arg11: memref<1x128xf32, #tpu.memory_space<vmem>>, %arg12: memref<1x128xf32, #tpu.memory_space<vmem>>, %arg13: memref<1x128xf32, #tpu.memory_space<vmem>>, %arg14: memref<1x1xf32, #tpu.memory_space<vmem>>, %arg15: memref<8x1xf32, #tpu.memory_space<vmem>>) attributes {dimension_semantics = [], scalar_prefetch = 0 : i64, scratch_operands = 0 : i64, tpu.core_type = #tpu.core_type<tc>} {
    %c0 = arith.constant 0 : index
    %c0_0 = arith.constant 0 : index
    %0 = vector.load %arg0[%c0, %c0_0] : memref<8x32xf32, #tpu.memory_space<vmem>>, vector<8x32xf32>
    %c0_1 = arith.constant 0 : index
    %c0_2 = arith.constant 0 : index
    %1 = vector.load %arg1[%c0_1, %c0_2] : memref<32x512xbf16, #tpu.memory_space<vmem>>, vector<32x512xbf16>
    %2 = arith.truncf %0 : vector<8x32xf32> to vector<8x32xbf16>
    %cst = arith.constant dense<0.000000e+00> : vector<8x512xf32>
    %3 = tpu.matmul %2, %1, %cst {dimension_numbers = #tpu.dot_dimension_numbers<[1], [0], [0], [1], [0, 0, 1, 1], [], []>} : vector<8x32xbf16>, vector<32x512xbf16>, vector<8x512xf32> -> vector<8x512xf32>
    %c0_3 = arith.constant 0 : index
    %c0_4 = arith.constant 0 : index
    %4 = vector.load %arg2[%c0_3, %c0_4] : memref<1x512xf32, #tpu.memory_space<vmem>>, vector<1x512xf32>
    %5 = vector.broadcast %4 : vector<1x512xf32> to vector<8x512xf32>
    %6 = arith.addf %3, %5 : vector<8x512xf32>
    %cst_5 = arith.constant 0.00999999977 : f32
    %7 = vector.broadcast %cst_5 : f32 to vector<8x512xf32>
    %8 = arith.mulf %7, %6 : vector<8x512xf32>
    %9 = arith.maximumf %6, %8 : vector<8x512xf32>
    %cst_6 = arith.constant dense<0.000000e+00> : vector<512xf32>
    %10 = vector.multi_reduction <add>, %9, %cst_6 [0] : vector<8x512xf32> to vector<512xf32>
    %11 = vector.shape_cast %10 : vector<512xf32> to vector<1x512xf32>
    %12 = arith.mulf %9, %9 : vector<8x512xf32>
    %cst_7 = arith.constant dense<0.000000e+00> : vector<512xf32>
    %13 = vector.multi_reduction <add>, %12, %cst_7 [0] : vector<8x512xf32> to vector<512xf32>
    %14 = vector.shape_cast %13 : vector<512xf32> to vector<1x512xf32>
    %15 = tpu.concatenate %11, %14 in 0 : vector<1x512xf32>, vector<1x512xf32> -> vector<2x512xf32>
    %c32_i32 = arith.constant 32 : i32
    %16 = tpu.dynamic_rotate %15 by %c32_i32 dim 1 : vector<2x512xf32>, i32 -> vector<2x512xf32>
    %17 = arith.addf %15, %16 : vector<2x512xf32>
    %c64_i32 = arith.constant 64 : i32
    %18 = tpu.dynamic_rotate %17 by %c64_i32 dim 1 : vector<2x512xf32>, i32 -> vector<2x512xf32>
    %19 = arith.addf %17, %18 : vector<2x512xf32>
    %c128_i32 = arith.constant 128 : i32
    %20 = tpu.dynamic_rotate %19 by %c128_i32 dim 1 : vector<2x512xf32>, i32 -> vector<2x512xf32>
    %21 = arith.addf %19, %20 : vector<2x512xf32>
    %c256_i32 = arith.constant 256 : i32
    %22 = tpu.dynamic_rotate %21 by %c256_i32 dim 1 : vector<2x512xf32>, i32 -> vector<2x512xf32>
    %23 = arith.addf %21, %22 : vector<2x512xf32>
    %24 = vector.extract_strided_slice %23 {offsets = [0, 0], sizes = [1, 512], strides = [1, 1]} : vector<2x512xf32> to vector<1x512xf32>
    %cst_8 = arith.constant 7.812500e-03 : f32
    %25 = vector.broadcast %cst_8 : f32 to vector<1x512xf32>
    %26 = arith.mulf %24, %25 : vector<1x512xf32>
    %27 = vector.extract_strided_slice %23 {offsets = [1, 0], sizes = [1, 512], strides = [1, 1]} : vector<2x512xf32> to vector<1x512xf32>
    %cst_9 = arith.constant 7.812500e-03 : f32
    %28 = vector.broadcast %cst_9 : f32 to vector<1x512xf32>
    %29 = arith.mulf %27, %28 : vector<1x512xf32>
    %30 = arith.mulf %26, %26 : vector<1x512xf32>
    %31 = arith.subf %29, %30 : vector<1x512xf32>
    %c0_10 = arith.constant 0 : index
    %c0_11 = arith.constant 0 : index
    %32 = vector.load %arg3[%c0_10, %c0_11] : memref<1x512xf32, #tpu.memory_space<vmem>>, vector<1x512xf32>
    %cst_12 = arith.constant 9.99999974E-6 : f32
    %33 = vector.broadcast %cst_12 : f32 to vector<1x512xf32>
    %34 = arith.addf %31, %33 : vector<1x512xf32>
    %35 = math.rsqrt %34 : vector<1x512xf32>
    %36 = arith.mulf %32, %35 : vector<1x512xf32>
    %c0_13 = arith.constant 0 : index
    %c0_14 = arith.constant 0 : index
    %37 = vector.load %arg4[%c0_13, %c0_14] : memref<1x512xf32, #tpu.memory_space<vmem>>, vector<1x512xf32>
    %38 = arith.mulf %26, %36 : vector<1x512xf32>
    %39 = arith.subf %37, %38 : vector<1x512xf32>
    %40 = vector.broadcast %36 : vector<1x512xf32> to vector<8x512xf32>
    %41 = arith.mulf %9, %40 : vector<8x512xf32>
    %42 = vector.broadcast %39 : vector<1x512xf32> to vector<8x512xf32>
    %43 = arith.addf %41, %42 : vector<8x512xf32>
    %c0_15 = arith.constant 0 : index
    %c0_16 = arith.constant 0 : index
    %44 = vector.load %arg5[%c0_15, %c0_16] : memref<512x256xbf16, #tpu.memory_space<vmem>>, vector<512x256xbf16>
    %45 = arith.truncf %43 : vector<8x512xf32> to vector<8x512xbf16>
    %cst_17 = arith.constant dense<0.000000e+00> : vector<8x256xf32>
    %46 = tpu.matmul %45, %44, %cst_17 {dimension_numbers = #tpu.dot_dimension_numbers<[1], [0], [0], [1], [0, 0, 1, 1], [], []>} : vector<8x512xbf16>, vector<512x256xbf16>, vector<8x256xf32> -> vector<8x256xf32>
    %c0_18 = arith.constant 0 : index
    %c0_19 = arith.constant 0 : index
    %47 = vector.load %arg6[%c0_18, %c0_19] : memref<1x256xf32, #tpu.memory_space<vmem>>, vector<1x256xf32>
    %48 = vector.broadcast %47 : vector<1x256xf32> to vector<8x256xf32>
    %49 = arith.addf %46, %48 : vector<8x256xf32>
    %cst_20 = arith.constant 0.00999999977 : f32
    %50 = vector.broadcast %cst_20 : f32 to vector<8x256xf32>
    %51 = arith.mulf %50, %49 : vector<8x256xf32>
    %52 = arith.maximumf %49, %51 : vector<8x256xf32>
    %cst_21 = arith.constant dense<0.000000e+00> : vector<256xf32>
    %53 = vector.multi_reduction <add>, %52, %cst_21 [0] : vector<8x256xf32> to vector<256xf32>
    %54 = vector.shape_cast %53 : vector<256xf32> to vector<1x256xf32>
    %55 = arith.mulf %52, %52 : vector<8x256xf32>
    %cst_22 = arith.constant dense<0.000000e+00> : vector<256xf32>
    %56 = vector.multi_reduction <add>, %55, %cst_22 [0] : vector<8x256xf32> to vector<256xf32>
    %57 = vector.shape_cast %56 : vector<256xf32> to vector<1x256xf32>
    %58 = tpu.concatenate %54, %57 in 0 : vector<1x256xf32>, vector<1x256xf32> -> vector<2x256xf32>
    %c32_i32_23 = arith.constant 32 : i32
    %59 = tpu.dynamic_rotate %58 by %c32_i32_23 dim 1 : vector<2x256xf32>, i32 -> vector<2x256xf32>
    %60 = arith.addf %58, %59 : vector<2x256xf32>
    %c64_i32_24 = arith.constant 64 : i32
    %61 = tpu.dynamic_rotate %60 by %c64_i32_24 dim 1 : vector<2x256xf32>, i32 -> vector<2x256xf32>
    %62 = arith.addf %60, %61 : vector<2x256xf32>
    %c128_i32_25 = arith.constant 128 : i32
    %63 = tpu.dynamic_rotate %62 by %c128_i32_25 dim 1 : vector<2x256xf32>, i32 -> vector<2x256xf32>
    %64 = arith.addf %62, %63 : vector<2x256xf32>
    %65 = vector.extract_strided_slice %64 {offsets = [0, 0], sizes = [1, 256], strides = [1, 1]} : vector<2x256xf32> to vector<1x256xf32>
    %cst_26 = arith.constant 1.562500e-02 : f32
    %66 = vector.broadcast %cst_26 : f32 to vector<1x256xf32>
    %67 = arith.mulf %65, %66 : vector<1x256xf32>
    %68 = vector.extract_strided_slice %64 {offsets = [1, 0], sizes = [1, 256], strides = [1, 1]} : vector<2x256xf32> to vector<1x256xf32>
    %cst_27 = arith.constant 1.562500e-02 : f32
    %69 = vector.broadcast %cst_27 : f32 to vector<1x256xf32>
    %70 = arith.mulf %68, %69 : vector<1x256xf32>
    %71 = arith.mulf %67, %67 : vector<1x256xf32>
    %72 = arith.subf %70, %71 : vector<1x256xf32>
    %c0_28 = arith.constant 0 : index
    %c0_29 = arith.constant 0 : index
    %73 = vector.load %arg7[%c0_28, %c0_29] : memref<1x256xf32, #tpu.memory_space<vmem>>, vector<1x256xf32>
    %cst_30 = arith.constant 9.99999974E-6 : f32
    %74 = vector.broadcast %cst_30 : f32 to vector<1x256xf32>
    %75 = arith.addf %72, %74 : vector<1x256xf32>
    %76 = math.rsqrt %75 : vector<1x256xf32>
    %77 = arith.mulf %73, %76 : vector<1x256xf32>
    %c0_31 = arith.constant 0 : index
    %c0_32 = arith.constant 0 : index
    %78 = vector.load %arg8[%c0_31, %c0_32] : memref<1x256xf32, #tpu.memory_space<vmem>>, vector<1x256xf32>
    %79 = arith.mulf %67, %77 : vector<1x256xf32>
    %80 = arith.subf %78, %79 : vector<1x256xf32>
    %81 = vector.broadcast %77 : vector<1x256xf32> to vector<8x256xf32>
    %82 = arith.mulf %52, %81 : vector<8x256xf32>
    %83 = vector.broadcast %80 : vector<1x256xf32> to vector<8x256xf32>
    %84 = arith.addf %82, %83 : vector<8x256xf32>
    %c0_33 = arith.constant 0 : index
    %c0_34 = arith.constant 0 : index
    %85 = vector.load %arg9[%c0_33, %c0_34] : memref<256x128xbf16, #tpu.memory_space<vmem>>, vector<256x128xbf16>
    %86 = arith.truncf %84 : vector<8x256xf32> to vector<8x256xbf16>
    %cst_35 = arith.constant dense<0.000000e+00> : vector<8x128xf32>
    %87 = tpu.matmul %86, %85, %cst_35 {dimension_numbers = #tpu.dot_dimension_numbers<[1], [0], [0], [1], [0, 0, 1, 1], [], []>} : vector<8x256xbf16>, vector<256x128xbf16>, vector<8x128xf32> -> vector<8x128xf32>
    %c0_36 = arith.constant 0 : index
    %c0_37 = arith.constant 0 : index
    %88 = vector.load %arg10[%c0_36, %c0_37] : memref<1x128xf32, #tpu.memory_space<vmem>>, vector<1x128xf32>
    %89 = vector.broadcast %88 : vector<1x128xf32> to vector<8x128xf32>
    %90 = arith.addf %87, %89 : vector<8x128xf32>
    %cst_38 = arith.constant 0.00999999977 : f32
    %91 = vector.broadcast %cst_38 : f32 to vector<8x128xf32>
    %92 = arith.mulf %91, %90 : vector<8x128xf32>
    %93 = arith.maximumf %90, %92 : vector<8x128xf32>
    %cst_39 = arith.constant dense<0.000000e+00> : vector<128xf32>
    %94 = vector.multi_reduction <add>, %93, %cst_39 [0] : vector<8x128xf32> to vector<128xf32>
    %95 = vector.shape_cast %94 : vector<128xf32> to vector<1x128xf32>
    %96 = arith.mulf %93, %93 : vector<8x128xf32>
    %cst_40 = arith.constant dense<0.000000e+00> : vector<128xf32>
    %97 = vector.multi_reduction <add>, %96, %cst_40 [0] : vector<8x128xf32> to vector<128xf32>
    %98 = vector.shape_cast %97 : vector<128xf32> to vector<1x128xf32>
    %99 = tpu.concatenate %95, %98 in 0 : vector<1x128xf32>, vector<1x128xf32> -> vector<2x128xf32>
    %c32_i32_41 = arith.constant 32 : i32
    %100 = tpu.dynamic_rotate %99 by %c32_i32_41 dim 1 : vector<2x128xf32>, i32 -> vector<2x128xf32>
    %101 = arith.addf %99, %100 : vector<2x128xf32>
    %c64_i32_42 = arith.constant 64 : i32
    %102 = tpu.dynamic_rotate %101 by %c64_i32_42 dim 1 : vector<2x128xf32>, i32 -> vector<2x128xf32>
    %103 = arith.addf %101, %102 : vector<2x128xf32>
    %104 = vector.extract_strided_slice %103 {offsets = [0, 0], sizes = [1, 128], strides = [1, 1]} : vector<2x128xf32> to vector<1x128xf32>
    %cst_43 = arith.constant 3.125000e-02 : f32
    %105 = vector.broadcast %cst_43 : f32 to vector<1x128xf32>
    %106 = arith.mulf %104, %105 : vector<1x128xf32>
    %107 = vector.extract_strided_slice %103 {offsets = [1, 0], sizes = [1, 128], strides = [1, 1]} : vector<2x128xf32> to vector<1x128xf32>
    %cst_44 = arith.constant 3.125000e-02 : f32
    %108 = vector.broadcast %cst_44 : f32 to vector<1x128xf32>
    %109 = arith.mulf %107, %108 : vector<1x128xf32>
    %110 = arith.mulf %106, %106 : vector<1x128xf32>
    %111 = arith.subf %109, %110 : vector<1x128xf32>
    %c0_45 = arith.constant 0 : index
    %c0_46 = arith.constant 0 : index
    %112 = vector.load %arg11[%c0_45, %c0_46] : memref<1x128xf32, #tpu.memory_space<vmem>>, vector<1x128xf32>
    %cst_47 = arith.constant 9.99999974E-6 : f32
    %113 = vector.broadcast %cst_47 : f32 to vector<1x128xf32>
    %114 = arith.addf %111, %113 : vector<1x128xf32>
    %115 = math.rsqrt %114 : vector<1x128xf32>
    %116 = arith.mulf %112, %115 : vector<1x128xf32>
    %c0_48 = arith.constant 0 : index
    %c0_49 = arith.constant 0 : index
    %117 = vector.load %arg12[%c0_48, %c0_49] : memref<1x128xf32, #tpu.memory_space<vmem>>, vector<1x128xf32>
    %118 = arith.mulf %106, %116 : vector<1x128xf32>
    %119 = arith.subf %117, %118 : vector<1x128xf32>
    %120 = vector.broadcast %116 : vector<1x128xf32> to vector<8x128xf32>
    %121 = arith.mulf %93, %120 : vector<8x128xf32>
    %122 = vector.broadcast %119 : vector<1x128xf32> to vector<8x128xf32>
    %123 = arith.addf %121, %122 : vector<8x128xf32>
    %c0_50 = arith.constant 0 : index
    %c0_51 = arith.constant 0 : index
    %124 = vector.load %arg13[%c0_50, %c0_51] : memref<1x128xf32, #tpu.memory_space<vmem>>, vector<1x128xf32>
    %125 = vector.broadcast %124 : vector<1x128xf32> to vector<8x128xf32>
    %126 = arith.mulf %123, %125 : vector<8x128xf32>
    %cst_52 = arith.constant dense<0.000000e+00> : vector<8xf32>
    %127 = vector.multi_reduction <add>, %126, %cst_52 [1] : vector<8x128xf32> to vector<8xf32>
    %128 = vector.shape_cast %127 : vector<8xf32> to vector<8x1xf32>
    %c0_53 = arith.constant 0 : index
    %c0_54 = arith.constant 0 : index
    %129 = vector.load %arg14[%c0_53, %c0_54] : memref<1x1xf32, #tpu.memory_space<vmem>>, vector<1x1xf32>
    %130 = vector.broadcast %129 : vector<1x1xf32> to vector<8x1xf32>
    %131 = arith.addf %128, %130 : vector<8x1xf32>
    %c0_55 = arith.constant 0 : index
    %c0_56 = arith.constant 0 : index
    %132 = vector.load %arg15[%c0_55, %c0_56] : memref<8x1xf32, #tpu.memory_space<vmem>>, vector<8x1xf32>
    tpu.vector_store %arg15[%c0_55, %c0_56], %131 {strides = array<i32>} : memref<8x1xf32, #tpu.memory_space<vmem>>, vector<8x1xf32>,
    return
  }
}

</mosaic_0001>

<bundles_post_ra>
// kernel: model_forward.1
= control target key start
LH: loop header
LB: loop body
LE: loop exit
PB: predicated region body
PF: predicated region fallthrough
CT: control target
= control target key end

     0   :  { %s2064_s0 = inlined_call_operand.hbm [shape: f32[8,32], index: 0, kind: input, shape index: {}]   ;;  %s2065_s1 = inlined_call_operand.hbm [shape: bf16[32,512], index: 1, kind: input, shape index: {}]   ;;  %s2066_s2 = inlined_call_operand.vmem [shape: f32[1,512], index: 2, kind: input, shape index: {}]   ;;  %s2067_s3 = inlined_call_operand.vmem [shape: f32[1,512], index: 3, kind: input, shape index: {}]   ;;  %s2068_s4 = inlined_call_operand.vmem [shape: f32[1,512], index: 4, kind: input, shape index: {}]   ;;  %s2069_s5 = inlined_call_operand.hbm [shape: bf16[512,256], index: 5, kind: input, shape index: {}]   ;;  %s2070_s6 = inlined_call_operand.vmem [shape: f32[1,256], index: 6, kind: input, shape index: {}]   ;;  %s2071_s7 = inlined_call_operand.vmem [shape: f32[1,256], index: 7, kind: input, shape index: {}]   ;;  %s2072_s8 = inlined_call_operand.vmem [shape: f32[1,256], index: 8, kind: input, shape index: {}]   ;;  %s2073_s9 = inlined_call_operand.hbm [shape: bf16[256,128], index: 9, kind: input, shape index: {}]   ;;  %s2074_s10 = inlined_call_operand.vmem [shape: f32[1,128], index: 10, kind: input, shape index: {}]   ;;  %s2075_s11 = inlined_call_operand.vmem [shape: f32[1,128], index: 11, kind: input, shape index: {}]   ;;  %s2076_s12 = inlined_call_operand.vmem [shape: f32[1,128], index: 12, kind: input, shape index: {}]   ;;  %s2077_s13 = inlined_call_operand.vmem [shape: f32[1,128], index: 13, kind: input, shape index: {}]   ;;  %s2078_s14 = inlined_call_operand.<no memory space> [shape: f32[1,1], index: 14, kind: input, shape index: {}]   ;;  %s2079_s15 = inlined_call_operand.vmem [shape: f32[8,1], index: 15, kind: output, shape index: {}]  }
   0x1   :  { %v20_v0 = vstv %s2078_s14 }
   0x2   :  { %21 = vst [vmem:[#allocation2] sm:$0x1] %v20_v0 }
   0x3   :  { %22 = vsyncpa [#allocation4], 0 }
   0x4   :  { %23 = vsyncpa [#allocation6], 0 }
   0x5   :  { %24 = vsyncpa [#allocation9], 0  ;;  %s1728_s20 = smov [#allocation5]   ;;  %s1634_s24 = scalar_lea.hbm %s2065_s1, 1024 }
   0x6   :  { %s40_s21 = sshll.u32 %s1728_s20, 4  ;;  %p1635_p0 = scmp.ne.s32.totalorder %s2065_s1, %s1634_s24  ;;  %s41_s21 = int_to_ptr.vmem [resolvable:$true] %s40_s21 }
   0x7   :  { %p1638_p1 = scmp.lt.u32.totalorder %s1634_s24, %s2065_s1 }
   0x9   :  { %p1640_p2 = pnand %p1638_p1, %p1635_p0 }
   0xb   :  { %1643 = shalt.err (!%p1640_p2)
}
   0xc   :  { %s1644_s14 = scalar_lea.vmem %s41_s21, 1024  ;;  %p1649_p4 = scmp.lt.s32.totalorder %s41_s21, %s41_s21 }
   0xd   :  { %p1645_p3 = scmp.ne.s32.totalorder %s41_s21, %s1644_s14  ;;  %p1650_p5 = scmp.lt.s32.totalorder %s1644_s14, %s1644_s14 }
   0xf   :  { %p1651_p6 = por %p1650_p5, %p1649_p4 }
  0x11   :  { %p1652_p7 = pnand %p1651_p6, %p1645_p3 }
  0x13   :  { %1655 = shalt.err (!%p1652_p7)
}
  0x14   :  { %s1729_s29 = smov 256   ;;  %s1730_s30 = smov 16  }
  0x15   :  { %46 = dma.hbm_to_vmem [thread:$0]  %s2065_s1, 1024, %s41_s21, [#allocation6], %s1729_s29, %s1729_s29, %s1730_s30  }
  0x16   :  { %s1731_s18 = smov [#allocation3]   ;;  %s1732_s20 = smov [#allocation7]  }
  0x17   :  { %s31_s19 = sshll.u32 %s1731_s18, 4  ;;  %s58_s22 = sshll.u32 %s1732_s20, 4  ;;  %s32_s19 = int_to_ptr.vmem [resolvable:$true] %s31_s19  ;;  %s59_s22 = int_to_ptr.vmem [resolvable:$true] %s58_s22 }
  0x18   :  { %s1656_s25 = scalar_lea.hbm %s2064_s0, 128 }
  0x19   :  { %p1657_p8 = scmp.ne.s32.totalorder %s2064_s0, %s1656_s25  ;;  %p1660_p9 = scmp.lt.u32.totalorder %s1656_s25, %s2064_s0 }
  0x1b   :  { %p1662_p10 = pnand %p1660_p9, %p1657_p8 }
  0x1d   :  { %1665 = shalt.err (!%p1662_p10)
}
  0x1e   :  { %s1666_s1 = scalar_lea.vmem %s32_s19, 128  ;;  %p1671_p12 = scmp.lt.s32.totalorder %s32_s19, %s32_s19 }
  0x1f   :  { %p1667_p11 = scmp.ne.s32.totalorder %s32_s19, %s1666_s1  ;;  %p1672_p13 = scmp.lt.s32.totalorder %s1666_s1, %s1666_s1 }
  0x21   :  { %p1673_p0 = por %p1672_p13, %p1671_p12 }
  0x23   :  { %p1674_p1 = pnand %p1673_p0, %p1667_p11 }
  0x25   :  { %1677 = shalt.err (!%p1674_p1)
}
  0x26   :  { %34 = dma.hbm_to_vmem [thread:$0]  %s2064_s0, 128, %s32_s19, [#allocation4]  }
  0x27   :  { %s1678_s17 = scalar_lea.hbm %s2069_s5, 8192 }
  0x28   :  { %p1679_p2 = scmp.ne.s32.totalorder %s2069_s5, %s1678_s17  ;;  %p1682_p3 = scmp.lt.u32.totalorder %s1678_s17, %s2069_s5 }
  0x2a   :  { %p1684_p4 = pnand %p1682_p3, %p1679_p2 }
  0x2c   :  { %1687 = shalt.err (!%p1684_p4)
}
  0x2d   :  { %s1688_s25 = scalar_lea.vmem %s59_s22, 8192  ;;  %p1693_p6 = scmp.lt.s32.totalorder %s59_s22, %s59_s22 }
  0x2e   :  { %p1689_p5 = scmp.ne.s32.totalorder %s59_s22, %s1688_s25  ;;  %p1694_p7 = scmp.lt.s32.totalorder %s1688_s25, %s1688_s25 }
  0x30   :  { %p1695_p8 = por %p1694_p7, %p1693_p6 }
  0x32   :  { %p1696_p9 = pnand %p1695_p8, %p1689_p5 }
  0x34   :  { %1699 = shalt.err (!%p1696_p9)
}
  0x35   :  { %s1733_s0 = smov 128   ;;  %s1734_s19 = smov 8  }
  0x36   :  { %64 = dma.hbm_to_vmem [thread:$0]  %s2069_s5, 8192, %s59_s22, [#allocation6], %s1733_s0, %s1733_s0, %s1734_s19  }
  0x37   :  { %s1735_s28 = smov [#allocation8]   ;;  %s1700_s29 = scalar_lea.hbm %s2073_s9, 2048 }
  0x38   :  { %s76_s14 = sshll.u32 %s1735_s28, 4  ;;  %p1701_p10 = scmp.ne.s32.totalorder %s2073_s9, %s1700_s29  ;;  %s77_s14 = int_to_ptr.vmem [resolvable:$true] %s76_s14 }
  0x39   :  { %p1704_p11 = scmp.lt.u32.totalorder %s1700_s29, %s2073_s9 }
  0x3b   :  { %p1706_p12 = pnand %p1704_p11, %p1701_p10 }
  0x3d   :  { %1709 = shalt.err (!%p1706_p12)
}
  0x3e   :  { %s1710_s20 = scalar_lea.vmem %s77_s14, 2048  ;;  %p1715_p0 = scmp.lt.s32.totalorder %s77_s14, %s77_s14 }
  0x3f   :  { %p1711_p13 = scmp.ne.s32.totalorder %s77_s14, %s1710_s20  ;;  %p1716_p1 = scmp.lt.s32.totalorder %s1710_s20, %s1710_s20 }
  0x41   :  { %p1717_p2 = por %p1716_p1, %p1715_p0 }
  0x43   :  { %p1718_p3 = pnand %p1717_p2, %p1711_p13 }
  0x45   :  { %1721 = shalt.err (!%p1718_p3)
}
  0x46   :  { %s1736_s5 = smov 64   ;;  %s1737_s22 = smov 4  }
  0x47   :  { %82 = dma.hbm_to_vmem [thread:$0]  %s2073_s9, 2048, %s77_s14, [#allocation9], %s1736_s5, %s1736_s5, %s1737_s22  }
  0x48   :  { %1722 = dma.done.wait [#allocation4], 128  }
  0x49   :  { %1723 = vsyncadd [#allocation4], 4294967168 }
  0x4a   :  { %1724 = dma.done.wait [#allocation6], 9216  }
  0x4b   :  { %1725 = vsyncadd [#allocation6], 4294958080 }
  0x4c   :  { %1726 = dma.done.wait [#allocation9], 2048  }
  0x4d   :  { %1727 = vsyncadd [#allocation9], 4294965248  ;;  %v1738_v1 = vmov 0   ;;  %v1502_v2 = vld [vmem:[#allocation5 + $0x4] ss:$16 sps:$4 sm:$0xff]   ;;  %v106_v6 = vld [vmem:[#allocation3] sm:$0xff]  ;;  %v118_v12 = vlaneseq }
  0x4e   :  { %214 = vmatprep.mubr.bf16.mxu0 %v1738_v1  ;;  %v1504_v3 = vld [vmem:[#allocation5] ss:$16 sps:$4 sm:$0xff]   ;;  %182 = vmatprep.subr.bf16.mxu0 %v1502_v2  ;;  %v1505_v4 = vld [vmem:[#allocation5 + $0x24] ss:$16 sps:$4 sm:$0xff]   ;;  %v1510_v7 = vld [vmem:[#allocation5 + $0xc] ss:$16 sps:$4 sm:$0xff]   ;;  %v115_v9 = vpack.c.bf16 %v106_v6, %v106_v6 }
  0x4f   :  { %v1507_v5 = vld [vmem:[#allocation5 + $0x20] ss:$16 sps:$4 sm:$0xff]   ;;  %183 = vmatpush1.bf16.msra.mxu0 %v1504_v3  ;;  %v1508_v8 = vld [vmem:[#allocation5 + $0x8] ss:$16 sps:$4 sm:$0xff]   ;;  %v1513_v10 = vld [vmem:[#allocation5 + $0x2c] ss:$16 sps:$4 sm:$0xff]  }
  0x50   :  { %184 = vmatprep.subr.bf16.mxu0 %v1505_v4  ;;  %vm178_vm0 = vcmask 261120   ;;  %v1511_v11 = vld [vmem:[#allocation5 + $0x28] ss:$16 sps:$4 sm:$0xff]   ;;  %v1875_v13 = vshrl.u32 %v118_v12, 7  ;;  %vm324_vm1 = vcmask 1040384   ;;  %vm1361_vm4 = vcmask 7168  }
  0x51   :  { %v116_v15 = vld [vmem:[%s2066_s2] sm:$0xf]  ;;  %s1739_s2 = smov 32  }
  0x52   :  { %v1878_v14 = vsub.s32 0, %v1875_v13  ;;  %v1884_v16 = vsub.s32 1, %v1875_v13  ;;  %v1889_v22 = vsub.s32 2, %v1875_v13  ;;  %v1892_v25 = vsub.s32 3, %v1875_v13 }
  0x53   :  { %185 = vmatpush1.bf16.msra.mxu0 %v1507_v5 }
  0x54   :  { %223 = vmatprep.subr.bf16.mxu0 %v1510_v7  ;;  %v121_v17 = vrot.slane %v116_v15, %v1878_v14  ;;  %v125_v18 = vrot.slane %v116_v15, %v1884_v16  ;;  %v129_v30 = vrot.slane %v116_v15, %v1889_v22  ;;  %v133_v32 = vrot.slane %v116_v15, %v1892_v25 }
  0x56   :  { %1378 = vmatmul.mubr.msk.bf16.vlgmr.msra.gmra.mrb[0].mxu0 %vm178_vm0, %v115_v9 }
  0x57   :  { %224 = vmatpush1.bf16.msra.mxu0 %v1508_v8  ;;  %255 = vmatprep.mubr.bf16.mxu0 %v1738_v1 }
  0x58   :  { %225 = vmatprep.subr.bf16.mxu0 %v1513_v10 }
  0x5b   :  { %226 = vmatpush1.bf16.msra.mxu0 %v1511_v11 }
  0x5e   :  { %1379 = vmatmul.mubr.msk.bf16.vlgmr.msra.gmra.mrb[4].mxu0 %vm178_vm0, %v115_v9 }
 0x129   :  { %v216_v19 = vpop.f32.mrb[0].mxu0 }
 0x12a   :  { %v217_v20 = vadd.f32 %v216_v19, %v121_v17  ;;  %v218_v21 = vpop.f32.mrb[1].mxu0 }
 0x12b   :  { %v219_v23 = vadd.f32 %v218_v21, %v125_v18  ;;  %v220_v24 = vpop.f32.mrb[2].mxu0 }
 0x12c   :  { %v264_v26 = vmul.f32 0.01, %v217_v20  ;;  %v221_v27 = vpop.f32.mrb[3].mxu0 }
 0x12d   :  { %v265_v28 = vmul.f32 0.01, %v219_v23 }
 0x12e   :  { %v1894_v29 = vmax.f32 %v217_v20, %v264_v26 }
 0x12f   :  { %v1897_v31 = vmax.f32 %v219_v23, %v265_v28 }
 0x130   :  { %v272_v33 = vrot.slane %v1894_v29, 4  ;;  %v296_v34 = vmul.f32 %v1894_v29, %v1894_v29 }
 0x131   :  { %v278_v35 = vrot.slane %v1897_v31, 4  ;;  %v297_v36 = vmul.f32 %v1897_v31, %v1897_v31  ;;  %v257_v37 = vpop.f32.mrb[4].mxu0 }
 0x132   :  { %v258_v38 = vadd.f32 %v257_v37, %v129_v30  ;;  %v259_v39 = vpop.f32.mrb[5].mxu0  ;;  %v273_v40 = vadd.f32 %v272_v33, %v1894_v29  ;;  %v300_v41 = vrot.slane %v296_v34, 4 }
 0x133   :  { %v260_v42 = vadd.f32 %v259_v39, %v133_v32  ;;  %v261_v43 = vpop.f32.mrb[6].mxu0  ;;  %v279_v44 = vadd.f32 %v278_v35, %v1897_v31  ;;  %v306_v45 = vrot.slane %v297_v36, 4 }
 0x134   :  { %v266_v46 = vmul.f32 0.01, %v258_v38  ;;  %v262_v47 = vpop.f32.mrb[7].mxu0  ;;  %v274_v48 = vrot.slane %v273_v40, 2  ;;  %v301_v49 = vadd.f32 %v300_v41, %v296_v34  ;;  %v1514_v43 = vld [vmem:[#allocation7 + $0x4] ss:$8 sps:$4 sm:$0xff]  }
 0x135   :  { %v267_v50 = vmul.f32 0.01, %v260_v42  ;;  %v280_v51 = vrot.slane %v279_v44, 2  ;;  %v307_v52 = vadd.f32 %v306_v45, %v297_v36  ;;  %v1518_v45 = vld [vmem:[#allocation7 + $0x104] ss:$8 sps:$4 sm:$0xff]   ;;  %893 = vmatprep.subr.bf16.mxu1 %v1514_v43 }
 0x136   :  { %v1908_v53 = vmax.f32 %v258_v38, %v266_v46  ;;  %v275_v54 = vadd.f32 %v274_v48, %v273_v40  ;;  %v302_v55 = vrot.slane %v301_v49, 2  ;;  %934 = vmatprep.subr.bf16.mxu0 %v1518_v45  ;;  %v1929_v46 = vand.u32 127, %v118_v12  ;;  %v1519_v48 = vld [vmem:[#allocation7] ss:$8 sps:$4 sm:$0xff]   ;;  %v1580_v45 = vld [vmem:[#allocation7 + $0xb4] ss:$8 sps:$4 sm:$0xff]  }
 0x137   :  { %v1910_v56 = vmax.f32 %v260_v42, %v267_v50  ;;  %v281_v57 = vadd.f32 %v280_v51, %v279_v44  ;;  %v308_v58 = vrot.slane %v307_v52, 2  ;;  %v1516_v44 = vld [vmem:[#allocation7 + $0x100] ss:$8 sps:$4 sm:$0xff]   ;;  %894 = vmatpush1.bf16.msra.mxu1 %v1519_v48  ;;  %v1520_v50 = vld [vmem:[#allocation7 + $0x14] ss:$8 sps:$4 sm:$0xff]  }
 0x138   :  { %v284_v59 = vrot.slane %v1908_v53, 4  ;;  %v298_v60 = vmul.f32 %v1908_v53, %v1908_v53  ;;  %v276_v61 = vrot.slane %v275_v54, 1  ;;  %v303_v62 = vadd.f32 %v302_v55, %v301_v49  ;;  %935 = vmatpush1.bf16.msra.mxu0 %v1516_v44  ;;  %v1524_v51 = vld [vmem:[#allocation7 + $0x114] ss:$8 sps:$4 sm:$0xff]   ;;  %895 = vmatprep.subr.bf16.mxu1 %v1520_v50  ;;  %v1576_v43 = vld [vmem:[#allocation7 + $0x1a0] ss:$8 sps:$4 sm:$0xff]  }
 0x139   :  { %v290_v63 = vrot.slane %v1910_v56, 4  ;;  %v299_v0 = vmul.f32 %v1910_v56, %v1910_v56  ;;  %v309_v1 = vadd.f32 %v308_v58, %v307_v52  ;;  %v282_v5 = vrot.slane %v281_v57, 1  ;;  %936 = vmatprep.subr.bf16.mxu0 %v1524_v51  ;;  %v1526_v58 = vld [vmem:[#allocation7 + $0x24] ss:$8 sps:$4 sm:$0xff]   ;;  %v1579_v44 = vld [vmem:[#allocation7 + $0xa0] ss:$8 sps:$4 sm:$0xff]  }
 0x13a   :  { %v304_v2 = vrot.slane %v303_v62, 1  ;;  %v285_v3 = vadd.f32 %v284_v59, %v1908_v53  ;;  %v312_v4 = vrot.slane %v298_v60, 4  ;;  %v277_v9 = vadd.f32 %v276_v61, %v275_v54  ;;  %v1522_v54 = vld [vmem:[#allocation7 + $0x110] ss:$8 sps:$4 sm:$0xff]   ;;  %v1530_v59 = vld [vmem:[#allocation7 + $0x124] ss:$8 sps:$4 sm:$0xff]  }
 0x13b   :  { %v310_v6 = vrot.slane %v309_v1, 1  ;;  %v291_v7 = vadd.f32 %v290_v63, %v1910_v56  ;;  %v318_v8 = vrot.slane %v299_v0, 4  ;;  %v283_v26 = vadd.f32 %v282_v5, %v281_v57  ;;  %v1525_v57 = vld [vmem:[#allocation7 + $0x10] ss:$8 sps:$4 sm:$0xff]   ;;  %v1531_v61 = vld [vmem:[#allocation7 + $0x20] ss:$8 sps:$4 sm:$0xff]  }
 0x13c   :  { %v305_v10 = vadd.f32 %v304_v2, %v303_v62  ;;  %v286_v11 = vrot.slane %v285_v3, 2  ;;  %v313_v15 = vadd.f32 %v312_v4, %v298_v60  ;;  %vm339_vm2 = vcmp.lt.s32.totalorder %v1929_v46, 32  ;;  %937 = vmatpush1.bf16.msra.mxu0 %v1522_v54  ;;  %896 = vmatpush1.bf16.msra.mxu1 %v1525_v57  ;;  %v1528_v60 = vld [vmem:[#allocation7 + $0x120] ss:$8 sps:$4 sm:$0xff]   ;;  %v1536_v2 = vld [vmem:[#allocation7 + $0x134] ss:$8 sps:$4 sm:$0xff]  }
 0x13d   :  { %v292_v17 = vrot.slane %v291_v7, 2  ;;  %v319_v18 = vadd.f32 %v318_v8, %v299_v0  ;;  %v311_v20 = vadd.f32 %v310_v6, %v309_v1  ;;  %897 = vmatprep.subr.bf16.mxu1 %v1526_v58  ;;  %938 = vmatprep.subr.bf16.mxu0 %v1530_v59  ;;  %v1532_v1 = vld [vmem:[#allocation7 + $0x34] ss:$8 sps:$4 sm:$0xff]   ;;  %v1534_v5 = vld [vmem:[#allocation7 + $0x130] ss:$8 sps:$4 sm:$0xff]   ;;  %vm356_vm3 = vcmp.lt.s32.totalorder %v1929_v46, 64 }
 0x13e   :  { %v325_v19 = vsel %vm324_vm1, %v277_v9, %v305_v10  ;;  %v287_v21 = vadd.f32 %v286_v11, %v285_v3  ;;  %v314_v23 = vrot.slane %v313_v15, 2  ;;  %v1537_v6 = vld [vmem:[#allocation7 + $0x30] ss:$8 sps:$4 sm:$0xff]   ;;  %v1538_v8 = vld [vmem:[#allocation7 + $0x44] ss:$8 sps:$4 sm:$0xff]  }
 0x13f   :  { %329 = vrot.lane.b32.xlu0 %v325_v19, %s1739_s2  ;;  %v320_v24 = vrot.slane %v319_v18, 2  ;;  %v293_v30 = vadd.f32 %v292_v17, %v291_v7  ;;  %v326_v33 = vsel %vm324_vm1, %v283_v26, %v311_v20  ;;  %v1542_v9 = vld [vmem:[#allocation7 + $0x144] ss:$8 sps:$4 sm:$0xff]   ;;  %v1540_v11 = vld [vmem:[#allocation7 + $0x140] ss:$8 sps:$4 sm:$0xff]  }
 0x140   :  { %v288_v27 = vrot.slane %v287_v21, 1  ;;  %v315_v28 = vadd.f32 %v314_v23, %v313_v15  ;;  %898 = vmatpush1.bf16.msra.mxu1 %v1531_v61  ;;  %939 = vmatpush1.bf16.msra.mxu0 %v1528_v60  ;;  %v1543_v15 = vld [vmem:[#allocation7 + $0x40] ss:$8 sps:$4 sm:$0xff]   ;;  %v1544_v17 = vld [vmem:[#allocation7 + $0x54] ss:$8 sps:$4 sm:$0xff]  }
 0x141   :  { %v321_v32 = vadd.f32 %v320_v24, %v319_v18  ;;  %v294_v38 = vrot.slane %v293_v30, 1  ;;  %899 = vmatprep.subr.bf16.mxu1 %v1532_v1  ;;  %940 = vmatprep.subr.bf16.mxu0 %v1536_v2  ;;  %v1548_v18 = vld [vmem:[#allocation7 + $0x154] ss:$8 sps:$4 sm:$0xff]   ;;  %v1549_v20 = vld [vmem:[#allocation7 + $0x50] ss:$8 sps:$4 sm:$0xff]  }
 0x142   :  { %v316_v34 = vrot.slane %v315_v28, 1  ;;  %v289_v36 = vadd.f32 %v288_v27, %v287_v21  ;;  %v1550_v21 = vld [vmem:[#allocation7 + $0x64] ss:$8 sps:$4 sm:$0xff]   ;;  %v1552_v23 = vld [vmem:[#allocation7 + $0x160] ss:$8 sps:$4 sm:$0xff]  }
 0x143   :  { %331 = vrot.lane.b32.xlu0 %v326_v33, %s1739_s2  ;;  %v322_v35 = vrot.slane %v321_v32, 1  ;;  %v295_v41 = vadd.f32 %v294_v38, %v293_v30  ;;  %v1554_v24 = vld [vmem:[#allocation7 + $0x164] ss:$8 sps:$4 sm:$0xff]   ;;  %v1555_v26 = vld [vmem:[#allocation7 + $0x60] ss:$8 sps:$4 sm:$0xff]  }
 0x144   :  { %v317_v37 = vadd.f32 %v316_v34, %v315_v28  ;;  %900 = vmatpush1.bf16.msra.mxu1 %v1537_v6  ;;  %941 = vmatpush1.bf16.msra.mxu0 %v1534_v5  ;;  %v1556_v27 = vld [vmem:[#allocation7 + $0x74] ss:$8 sps:$4 sm:$0xff]   ;;  %v1558_v30 = vld [vmem:[#allocation7 + $0x170] ss:$8 sps:$4 sm:$0xff]   ;;  %v1566_v34 = vld [vmem:[#allocation7 + $0x184] ss:$8 sps:$4 sm:$0xff]  }
 0x145   :  { %v323_v40 = vadd.f32 %v322_v35, %v321_v32  ;;  %901 = vmatprep.subr.bf16.mxu1 %v1538_v8  ;;  %942 = vmatprep.subr.bf16.mxu0 %v1542_v9  ;;  %v1560_v28 = vld [vmem:[#allocation7 + $0x174] ss:$8 sps:$4 sm:$0xff]   ;;  %v1561_v32 = vld [vmem:[#allocation7 + $0x70] ss:$8 sps:$4 sm:$0xff]   ;;  %v1564_v35 = vld [vmem:[#allocation7 + $0x180] ss:$8 sps:$4 sm:$0xff]  }
 0x146   :  { %v327_v39 = vsel %vm324_vm1, %v289_v36, %v317_v37  ;;  %v1567_v36 = vld [vmem:[#allocation7 + $0x80] ss:$8 sps:$4 sm:$0xff]   ;;  %v1568_v37 = vld [vmem:[#allocation7 + $0x94] ss:$8 sps:$4 sm:$0xff]   ;;  %v1582_v48 = vld [vmem:[#allocation7 + $0x1b0] ss:$8 sps:$4 sm:$0xff]  }
 0x147   :  { %333 = vrot.lane.b32.xlu1 %v327_v39, %s1739_s2  ;;  %v328_v42 = vsel %vm324_vm1, %v295_v41, %v323_v40  ;;  %v1572_v38 = vld [vmem:[#allocation7 + $0x194] ss:$8 sps:$4 sm:$0xff]   ;;  %v1573_v40 = vld [vmem:[#allocation7 + $0x90] ss:$8 sps:$4 sm:$0xff]   ;;  %v1574_v41 = vld [vmem:[#allocation7 + $0xa4] ss:$8 sps:$4 sm:$0xff]  }
 0x148   :  { %902 = vmatpush1.bf16.msra.mxu1 %v1543_v15  ;;  %943 = vmatpush1.bf16.msra.mxu0 %v1540_v11  ;;  %v1586_v50 = vld [vmem:[#allocation7 + $0xc4] ss:$8 sps:$4 sm:$0xff]   ;;  %v1591_v54 = vld [vmem:[#allocation7 + $0xc0] ss:$8 sps:$4 sm:$0xff]   ;;  %v1592_v57 = vld [vmem:[#allocation7 + $0xd4] ss:$8 sps:$4 sm:$0xff]  }
 0x149   :  { %903 = vmatprep.subr.bf16.mxu1 %v1544_v17  ;;  %944 = vmatprep.subr.bf16.mxu0 %v1548_v18  ;;  %v1590_v51 = vld [vmem:[#allocation7 + $0x1c4] ss:$8 sps:$4 sm:$0xff]   ;;  %v1594_v58 = vld [vmem:[#allocation7 + $0x1d0] ss:$8 sps:$4 sm:$0xff]   ;;  %v1608_v1 = vld [vmem:[#allocation7 + $0x1f4] ss:$8 sps:$4 sm:$0xff]  }
 0x14a   :  { %v1597_v59 = vld [vmem:[#allocation7 + $0xd0] ss:$8 sps:$4 sm:$0xff]   ;;  %v1598_v60 = vld [vmem:[#allocation7 + $0xe4] ss:$8 sps:$4 sm:$0xff]  }
 0x14b   :  { %335 = vrot.lane.b32.xlu1 %v328_v42, %s1739_s2  ;;  %v1602_v61 = vld [vmem:[#allocation7 + $0x1e4] ss:$8 sps:$4 sm:$0xff]   ;;  %v1606_v2 = vld [vmem:[#allocation7 + $0x1f0] ss:$8 sps:$4 sm:$0xff]  }
 0x14c   :  { %904 = vmatpush1.bf16.msra.mxu1 %v1549_v20  ;;  %v1609_v5 = vld [vmem:[#allocation7 + $0xf0] ss:$8 sps:$4 sm:$0xff]  }
 0x14d   :  { %905 = vmatprep.subr.bf16.mxu1 %v1550_v21 }
 0x150   :  { %906 = vmatpush1.bf16.msra.mxu1 %v1555_v26 }
 0x151   :  { %907 = vmatprep.subr.bf16.mxu1 %v1556_v27 }
 0x154   :  { %908 = vmatpush1.bf16.msra.mxu1 %v1561_v32 }
 0x1b1   :  { %v330_v47 = vpop.permute.xlu0 %329 }
 0x1b5   :  { %v332_v49 = vpop.permute.xlu0 %331 }
 0x1b6   :  { %v342_v52 = vsel %vm339_vm2, %v330_v47, %v332_v49 }
 0x1b7   :  { %v1934_v55 = vadd.f32 %v342_v52, %v326_v33  ;;  %v1562_v33 = vld [vmem:[#allocation7 + $0x84] ss:$8 sps:$4 sm:$0xff]   ;;  %v1588_v52 = vld [vmem:[#allocation7 + $0x1c0] ss:$8 sps:$4 sm:$0xff]  }
 0x1b8   :  { %909 = vmatprep.subr.bf16.mxu1 %v1562_v33 }
 0x1b9   :  { %v334_v12 = vpop.permute.xlu1 %333  ;;  %350 = vrot.lane.b32.xlu1 %v1934_v55, %s1736_s5  ;;  %910 = vmatpush1.bf16.msra.mxu1 %v1567_v36 }
 0x1ba   :  { %v341_v7 = vsel %vm339_vm2, %v332_v49, %v334_v12  ;;  %911 = vmatprep.subr.bf16.mxu1 %v1568_v37  ;;  %v1585_v49 = vld [vmem:[#allocation7 + $0xb0] ss:$8 sps:$4 sm:$0xff]  }
 0x1bb   :  { %v1952_v10 = vadd.f32 %v341_v7, %v327_v39  ;;  %v1570_v39 = vld [vmem:[#allocation7 + $0x190] ss:$8 sps:$4 sm:$0xff]  }
 0x1bd   :  { %v336_v62 = vpop.permute.xlu1 %335  ;;  %912 = vmatpush1.bf16.msra.mxu1 %v1573_v40 }
 0x1be   :  { %v340_v63 = vsel %vm339_vm2, %v334_v12, %v336_v62  ;;  %v343_v0 = vsel %vm339_vm2, %v336_v62, %v330_v47  ;;  %913 = vmatprep.subr.bf16.mxu1 %v1574_v41  ;;  %v1584_v47 = vld [vmem:[#allocation7 + $0x1b4] ss:$8 sps:$4 sm:$0xff]   ;;  %v1600_v62 = vld [vmem:[#allocation7 + $0x1e0] ss:$8 sps:$4 sm:$0xff]  }
 0x1bf   :  { %v1942_v3 = vadd.f32 %v343_v0, %v325_v19  ;;  %v1944_v4 = vadd.f32 %v340_v63, %v328_v42  ;;  %v1546_v19 = vld [vmem:[#allocation7 + $0x150] ss:$8 sps:$4 sm:$0xff]   ;;  %v1578_v42 = vld [vmem:[#allocation7 + $0x1a4] ss:$8 sps:$4 sm:$0xff]   ;;  %v1596_v12 = vld [vmem:[#allocation7 + $0x1d4] ss:$8 sps:$4 sm:$0xff]  }
 0x1c0   :  { %945 = vmatpush1.bf16.msra.mxu0 %v1546_v19  ;;  %v1603_v63 = vld [vmem:[#allocation7 + $0xe0] ss:$8 sps:$4 sm:$0xff]   ;;  %v1604_v0 = vld [vmem:[#allocation7 + $0xf4] ss:$8 sps:$4 sm:$0xff]  }
 0x1c1   :  { %348 = vrot.lane.b32.xlu0 %v1942_v3, %s1736_s5  ;;  %354 = vrot.lane.b32.xlu1 %v1944_v4, %s1736_s5 }
 0x1c2   :  { %946 = vmatprep.subr.bf16.mxu0 %v1554_v24  ;;  %914 = vmatpush1.bf16.msra.mxu1 %v1579_v44 }
 0x1c3   :  { %915 = vmatprep.subr.bf16.mxu1 %v1580_v45 }
 0x1c4   :  { %947 = vmatpush1.bf16.msra.mxu0 %v1552_v23 }
 0x1c5   :  { %352 = vrot.lane.b32.xlu0 %v1952_v10, %s1736_s5  ;;  %948 = vmatprep.subr.bf16.mxu0 %v1560_v28 }
 0x1c6   :  { %916 = vmatpush1.bf16.msra.mxu1 %v1585_v49  ;;  %v383_v49 = vld [vmem:[%s2067_s3] sm:$0xf] }
 0x1c7   :  { %917 = vmatprep.subr.bf16.mxu1 %v1586_v50 }
 0x1c8   :  { %949 = vmatpush1.bf16.msra.mxu0 %v1558_v30 }
 0x1c9   :  { %950 = vmatprep.subr.bf16.mxu0 %v1566_v34 }
 0x1ca   :  { %918 = vmatpush1.bf16.msra.mxu1 %v1591_v54 }
 0x1cb   :  { %919 = vmatprep.subr.bf16.mxu1 %v1592_v57 }
 0x1cc   :  { %951 = vmatpush1.bf16.msra.mxu0 %v1564_v35 }
 0x1cd   :  { %952 = vmatprep.subr.bf16.mxu0 %v1572_v38 }
 0x1ce   :  { %920 = vmatpush1.bf16.msra.mxu1 %v1597_v59 }
 0x1cf   :  { %921 = vmatprep.subr.bf16.mxu1 %v1598_v60 }
 0x1d0   :  { %953 = vmatpush1.bf16.msra.mxu0 %v1570_v39 }
 0x1d1   :  { %954 = vmatprep.subr.bf16.mxu0 %v1578_v42 }
 0x1d2   :  { %922 = vmatpush1.bf16.msra.mxu1 %v1603_v63 }
 0x1d3   :  { %923 = vmatprep.subr.bf16.mxu1 %v1604_v0 }
 0x1d4   :  { %955 = vmatpush1.bf16.msra.mxu0 %v1576_v43 }
 0x1d5   :  { %956 = vmatprep.subr.bf16.mxu0 %v1584_v47 }
 0x1d6   :  { %924 = vmatpush1.bf16.msra.mxu1 %v1609_v5 }
 0x1d8   :  { %957 = vmatpush1.bf16.msra.mxu0 %v1582_v48 }
 0x1d9   :  { %958 = vmatprep.subr.bf16.mxu0 %v1590_v51 }
 0x1dc   :  { %959 = vmatpush1.bf16.msra.mxu0 %v1588_v52 }
 0x1dd   :  { %960 = vmatprep.subr.bf16.mxu0 %v1596_v12 }
 0x1e0   :  { %961 = vmatpush1.bf16.msra.mxu0 %v1594_v58 }
 0x1e1   :  { %962 = vmatprep.subr.bf16.mxu0 %v1602_v61 }
 0x1e4   :  { %963 = vmatpush1.bf16.msra.mxu0 %v1600_v62 }
 0x1e5   :  { %964 = vmatprep.subr.bf16.mxu0 %v1608_v1 }
 0x1e8   :  { %965 = vmatpush1.bf16.msra.mxu0 %v1606_v2  ;;  %v408_v2 = vld [vmem:[%s2068_s4] sm:$0xf] }
 0x22b   :  { %v351_v6 = vpop.permute.xlu1 %350 }
 0x233   :  { %v355_v7 = vpop.permute.xlu1 %354  ;;  %v349_v8 = vpop.permute.xlu0 %348 }
 0x234   :  { %v359_v9 = vsel %vm356_vm3, %v349_v8, %v351_v6  ;;  %v360_v11 = vsel %vm356_vm3, %v355_v7, %v349_v8 }
 0x235   :  { %v361_v15 = vadd.f32 %v360_v11, %v1942_v3  ;;  %v362_v17 = vadd.f32 %v359_v9, %v1934_v55 }
 0x237   :  { %v353_v18 = vpop.permute.xlu0 %352  ;;  %v366_v24 = vadd.f32 %v362_v17, %v361_v15 }
 0x238   :  { %v357_v19 = vsel %vm356_vm3, %v353_v18, %v355_v7  ;;  %v358_v20 = vsel %vm356_vm3, %v351_v6, %v353_v18 }
 0x239   :  { %v363_v21 = vadd.f32 %v358_v20, %v1952_v10  ;;  %v364_v23 = vadd.f32 %v357_v19, %v1944_v4  ;;  %v1740_v10 = vmov 1966171168  }
 0x23a   :  { %v392_v4 = vunpack.c.l.s4 %v1740_v10 }
 0x23b   :  { %v365_v26 = vadd.f32 %v364_v23, %v361_v15  ;;  %v367_v27 = vadd.f32 %v363_v21, %v362_v17  ;;  %v368_v28 = vadd.f32 %v364_v23, %v363_v21 }
 0x23c   :  { %v393_v41 = vunpack.c.0.s8 %v392_v4 }
 0x23d   :  { %v369_v30 = vadd.f32 %v367_v27, %v365_v26  ;;  %v370_v32 = vadd.f32 %v368_v28, %v366_v24 }
 0x23e   :  { %v1970_v43 = vsub.s32 %v393_v41, %v1875_v13 }
 0x23f   :  { %v371_v3 = vmul.f32 0.0078125, %v369_v30  ;;  %v372_v33 = vmul.f32 0.0078125, %v370_v32 }
 0x241   :  { %v373_v55 = vmul.f32 %v371_v3, %v371_v3  ;;  %v374_v34 = vmul.f32 %v372_v33, %v372_v33 }
 0x243   :  { %v377_v35 = vrot.slane %v373_v55, 7  ;;  %v378_v36 = vrot.slane %v374_v34, 7 }
 0x245   :  { %v381_v37 = vsub.f32 %v371_v3, %v377_v35  ;;  %v382_v38 = vsub.f32 %v372_v33, %v378_v36 }
 0x247   :  { %v384_v39 = vadd.f32 1e-05, %v381_v37  ;;  %v385_v40 = vadd.f32 1e-05, %v382_v38 }
 0x249   :  { %1626 = vrsqrt.f32 %v384_v39 }
 0x24a   :  { %1628 = vrsqrt.f32 %v385_v40 }
 0x253   :  { %v1627_v42 = vpop.eup %1626 }
 0x254   :  { %v1629_v44 = vpop.eup %1628 }
 0x255   :  { %v390_v45 = vcombine.low %v1627_v42, %v1629_v44 }
 0x257   :  { %v397_v47 = vrot.slane %v390_v45, %v1970_v43 }
 0x259   :  { %v398_v48 = vcombine.high %v397_v47, %v397_v47 }
 0x25b   :  { %v405_v50 = vrot.slane %v398_v48, %v1970_v43 }
 0x25d   :  { %v407_v51 = vmul.f32 %v405_v50, %v383_v49 }
 0x25f   :  { %v413_v52 = vrot.slane %v407_v51, %v1878_v14  ;;  %v417_v54 = vrot.slane %v407_v51, %v1884_v16  ;;  %v421_v57 = vrot.slane %v407_v51, %v1889_v22  ;;  %v425_v13 = vrot.slane %v407_v51, %v1892_v25 }
 0x261   :  { %v430_v12 = vmul.f32 %v413_v52, %v371_v3  ;;  %v431_v58 = vmul.f32 %v417_v54, %v372_v33  ;;  %v432_v59 = vmul.f32 %v421_v57, %v371_v3  ;;  %v433_v60 = vmul.f32 %v425_v13, %v372_v33 }
 0x262   :  { %v465_v7 = vmul.f32 %v417_v54, %v1897_v31  ;;  %v467_v8 = vmul.f32 %v425_v13, %v1910_v56  ;;  %v464_v9 = vmul.f32 %v413_v52, %v1894_v29  ;;  %v466_v11 = vmul.f32 %v421_v57, %v1908_v53 }
 0x263   :  { %v438_v61 = vcombine.low %v430_v12, %v431_v58  ;;  %v439_v62 = vcombine.low %v432_v59, %v433_v60 }
 0x265   :  { %v446_v63 = vrot.slane %v438_v61, %v1970_v43  ;;  %v453_v0 = vrot.slane %v439_v62, %v1970_v43 }
 0x267   :  { %v454_v1 = vcombine.low %v446_v63, %v453_v0 }
 0x269   :  { %v461_v5 = vrot.slane %v454_v1, %v1970_v43 }
 0x26b   :  { %v463_v6 = vsub.f32 %v408_v2, %v461_v5 }
 0x26d   :  { %v476_v15 = vrot.slane %v463_v6, %v1884_v16  ;;  %v484_v17 = vrot.slane %v463_v6, %v1892_v25  ;;  %v472_v18 = vrot.slane %v463_v6, %v1878_v14  ;;  %v480_v19 = vrot.slane %v463_v6, %v1889_v22  ;;  %v561_v25 = vld [vmem:[%s2070_s6] sm:$0x3] }
 0x26e   :  { %v566_v29 = vrot.slane %v561_v25, %v1878_v14  ;;  %v570_v22 = vrot.slane %v561_v25, %v1884_v16  ;;  %v1617_v25 = vld [vmem:[#allocation8 + $0x18] sm:$0xff]  }
 0x26f   :  { %v490_v20 = vadd.f32 %v476_v15, %v465_v7  ;;  %v492_v21 = vadd.f32 %v484_v17, %v467_v8  ;;  %v489_v23 = vadd.f32 %v472_v18, %v464_v9  ;;  %v491_v24 = vadd.f32 %v480_v19, %v466_v11 }
 0x271   :  { %v558_v26 = vpack.c.bf16 %v490_v20, %v490_v20  ;;  %v560_v31 = vpack.c.bf16 %v492_v21, %v492_v21  ;;  %v557_v27 = vpack.c.bf16 %v489_v23, %v489_v23  ;;  %v559_v56 = vpack.c.bf16 %v491_v24, %v491_v24  ;;  %v1610_v21 = vld [vmem:[#allocation8 + $0x40] sm:$0xff]   ;;  %v1612_v24 = vld [vmem:[#allocation8 + $0x48] sm:$0xff]  }
 0x272   :  { %v1611_v23 = vld [vmem:[#allocation8] sm:$0xff]   ;;  %1463 = vmatprep.subr.bf16.mxu1 %v1610_v21 }
 0x273   :  { %925 = vmatprep.mubr.bf16.mxu1 %v558_v26  ;;  %966 = vmatprep.mubr.bf16.mxu0 %v560_v31  ;;  %v1613_v26 = vld [vmem:[#allocation8 + $0x8] sm:$0xff]   ;;  %v1614_v31 = vld [vmem:[#allocation8 + $0x50] sm:$0xff]  }
 0x274   :  { %926 = vmatmul.mubr.bf16.vlgmr.msra.gmra.mrb[0].mxu1 %v557_v27  ;;  %967 = vmatmul.mubr.bf16.vlgmr.msra.gmra.mrb[8].mxu0 %v559_v56  ;;  %v1615_v27 = vld [vmem:[#allocation8 + $0x10] sm:$0xff]   ;;  %v1616_v56 = vld [vmem:[#allocation8 + $0x58] sm:$0xff]  }
 0x275   :  { %1464 = vmatpush3.bf16.msra.mxu1 %v1611_v23 }
 0x276   :  { %1465 = vmatprep.subr.bf16.mxu1 %v1612_v24 }
 0x279   :  { %1466 = vmatpush3.bf16.msra.mxu1 %v1613_v26 }
 0x27a   :  { %1467 = vmatprep.subr.bf16.mxu1 %v1614_v31 }
 0x27d   :  { %1468 = vmatpush3.bf16.msra.mxu1 %v1615_v27 }
 0x27e   :  { %1469 = vmatprep.subr.bf16.mxu1 %v1616_v56 }
 0x281   :  { %1470 = vmatpush3.bf16.msra.mxu1 %v1617_v25 }
 0x347   :  { %v927_v53 = vpop.f32.mrb[0].mxu1  ;;  %v968_v28 = vpop.f32.mrb[8].mxu0 }
 0x348   :  { %v928_v30 = vadd.f32 %v927_v53, %v566_v29  ;;  %v929_v32 = vpop.f32.mrb[1].mxu1  ;;  %v970_v3 = vpop.f32.mrb[9].mxu0  ;;  %v1618_v29 = vld [vmem:[#allocation8 + $0x60] sm:$0xff]   ;;  %v1620_v53 = vld [vmem:[#allocation8 + $0x68] sm:$0xff]  }
 0x349   :  { %v930_v33 = vadd.f32 %v929_v32, %v570_v22  ;;  %v931_v55 = vpop.f32.mrb[2].mxu1  ;;  %v972_v34 = vpop.f32.mrb[10].mxu0  ;;  %v1619_v22 = vld [vmem:[#allocation8 + $0x20] sm:$0xff]   ;;  %1471 = vmatprep.subr.bf16.mxu1 %v1618_v29  ;;  %v1623_v32 = vld [vmem:[#allocation8 + $0x30] sm:$0xff]  }
 0x34a   :  { %v969_v35 = vadd.f32 %v968_v28, %v928_v30  ;;  %v932_v36 = vpop.f32.mrb[3].mxu1  ;;  %v973_v37 = vpop.f32.mrb[11].mxu0  ;;  %1472 = vmatpush3.bf16.msra.mxu1 %v1619_v22  ;;  %v1621_v28 = vld [vmem:[#allocation8 + $0x28] sm:$0xff]   ;;  %v1622_v30 = vld [vmem:[#allocation8 + $0x70] sm:$0xff]  }
 0x34b   :  { %v971_v38 = vadd.f32 %v970_v3, %v930_v33  ;;  %1473 = vmatprep.subr.bf16.mxu1 %v1620_v53  ;;  %v1624_v3 = vld [vmem:[#allocation8 + $0x78] sm:$0xff]  }
 0x34c   :  { %v975_v39 = vmul.f32 0.01, %v969_v35  ;;  %v1625_v33 = vld [vmem:[#allocation8 + $0x38] sm:$0xff]  }
 0x34d   :  { %v976_v40 = vmul.f32 0.01, %v971_v38 }
 0x34e   :  { %v2000_v10 = vmax.f32 %v969_v35, %v975_v39  ;;  %1474 = vmatpush3.bf16.msra.mxu1 %v1621_v28 }
 0x34f   :  { %v2002_v4 = vmax.f32 %v971_v38, %v976_v40  ;;  %1475 = vmatprep.subr.bf16.mxu1 %v1622_v30 }
 0x350   :  { %v979_v41 = vrot.slane %v2000_v10, 4  ;;  %v991_v42 = vmul.f32 %v2000_v10, %v2000_v10 }
 0x351   :  { %v985_v44 = vrot.slane %v2002_v4, 4  ;;  %v992_v45 = vmul.f32 %v2002_v4, %v2002_v4 }
 0x352   :  { %v980_v47 = vadd.f32 %v979_v41, %v2000_v10  ;;  %v993_v48 = vrot.slane %v991_v42, 4  ;;  %1476 = vmatpush3.bf16.msra.mxu1 %v1623_v32 }
 0x353   :  { %v986_v49 = vadd.f32 %v985_v44, %v2002_v4  ;;  %v999_v50 = vrot.slane %v992_v45, 4  ;;  %1477 = vmatprep.subr.bf16.mxu1 %v1624_v3 }
 0x354   :  { %v981_v51 = vrot.slane %v980_v47, 2  ;;  %v994_v52 = vadd.f32 %v993_v48, %v991_v42 }
 0x355   :  { %v987_v54 = vrot.slane %v986_v49, 2  ;;  %v1000_v57 = vadd.f32 %v999_v50, %v992_v45 }
 0x356   :  { %v982_v13 = vadd.f32 %v981_v51, %v980_v47  ;;  %v995_v12 = vrot.slane %v994_v52, 2  ;;  %1478 = vmatpush3.bf16.msra.mxu1 %v1625_v33  ;;  %v1030_v51 = vld [vmem:[%s2071_s7] sm:$0x3] }
 0x357   :  { %v988_v58 = vadd.f32 %v987_v54, %v986_v49  ;;  %v1001_v59 = vrot.slane %v1000_v57, 2 }
 0x358   :  { %v983_v60 = vrot.slane %v982_v13, 1  ;;  %v996_v61 = vadd.f32 %v995_v12, %v994_v52 }
 0x359   :  { %v989_v62 = vrot.slane %v988_v58, 1  ;;  %v1002_v63 = vadd.f32 %v1001_v59, %v1000_v57 }
 0x35a   :  { %v997_v0 = vrot.slane %v996_v61, 1  ;;  %v984_v2 = vadd.f32 %v983_v60, %v982_v13  ;;  %v1052_v60 = vld [vmem:[%s2072_s8] sm:$0x3] }
 0x35b   :  { %v1003_v1 = vrot.slane %v1002_v63, 1  ;;  %v990_v6 = vadd.f32 %v989_v62, %v988_v58 }
 0x35c   :  { %v998_v5 = vadd.f32 %v997_v0, %v996_v61 }
 0x35d   :  { %v1004_v7 = vadd.f32 %v1003_v1, %v1002_v63 }
 0x35e   :  { %v1005_v8 = vsel %vm324_vm1, %v984_v2, %v998_v5 }
 0x35f   :  { %1007 = vrot.lane.b32.xlu0 %v1005_v8, %s1739_s2  ;;  %v1006_v9 = vsel %vm324_vm1, %v990_v6, %v1004_v7 }
 0x360   :  { %1009 = vrot.lane.b32.xlu1 %v1006_v9, %s1739_s2 }
 0x3d1   :  { %v1008_v11 = vpop.permute.xlu0 %1007 }
 0x3d2   :  { %v1010_v15 = vpop.permute.xlu1 %1009 }
 0x3d3   :  { %v1011_v17 = vsel %vm339_vm2, %v1008_v11, %v1010_v15  ;;  %v1012_v18 = vsel %vm339_vm2, %v1010_v15, %v1008_v11  ;;  %v1444_v11 = vld [vmem:[%s2074_s10] ss:$0 sm:$0xff] }
 0x3d4   :  { %v1013_v19 = vadd.f32 %v1012_v18, %v1005_v8  ;;  %v1014_v20 = vadd.f32 %v1011_v17, %v1006_v9 }
 0x3d6   :  { %1015 = vrot.lane.b32.xlu0 %v1013_v19, %s1736_s5  ;;  %1017 = vrot.lane.b32.xlu1 %v1014_v20, %s1736_s5 }
 0x448   :  { %v1016_v55 = vpop.permute.xlu0 %1015  ;;  %v1018_v34 = vpop.permute.xlu1 %1017 }
 0x449   :  { %v1019_v35 = vsel %vm356_vm3, %v1016_v55, %v1018_v34  ;;  %v1020_v36 = vsel %vm356_vm3, %v1018_v34, %v1016_v55 }
 0x44a   :  { %v1021_v37 = vadd.f32 %v1020_v36, %v1013_v19  ;;  %v1022_v38 = vadd.f32 %v1019_v35, %v1014_v20 }
 0x44c   :  { %v1023_v39 = vadd.f32 %v1022_v38, %v1021_v37 }
 0x44e   :  { %v1024_v40 = vmul.f32 0.015625, %v1023_v39 }
 0x450   :  { %v1025_v41 = vmul.f32 %v1024_v40, %v1024_v40 }
 0x452   :  { %v1027_v42 = vrot.slane %v1025_v41, 7 }
 0x454   :  { %v1029_v44 = vsub.f32 %v1024_v40, %v1027_v42  ;;  %v1305_v42 = vld [vmem:[%s2075_s11] sm:$0x1] }
 0x456   :  { %v1031_v45 = vadd.f32 1e-05, %v1029_v44 }
 0x458   :  { %1630 = vrsqrt.f32 %v1031_v45 }
 0x462   :  { %v1631_v47 = vpop.eup %1630 }
 0x463   :  { %v1034_v48 = vcombine.low %v1631_v47, %v1631_v47  ;;  %v1326_v47 = vld [vmem:[%s2076_s12] sm:$0x1] }
 0x465   :  { %v1041_v49 = vrot.slane %v1034_v48, %v1970_v43 }
 0x467   :  { %v1042_v50 = vcombine.high %v1041_v49, %v1041_v49 }
 0x469   :  { %v1049_v46 = vrot.slane %v1042_v50, %v1970_v43 }
 0x46b   :  { %v1051_v52 = vmul.f32 %v1049_v46, %v1030_v51 }
 0x46d   :  { %v1057_v54 = vrot.slane %v1051_v52, %v1878_v14  ;;  %v1061_v57 = vrot.slane %v1051_v52, %v1884_v16  ;;  %v1461_v52 = vld [vmem:[%s2077_s13] ss:$0 sm:$0xff] }
 0x46f   :  { %v1064_v13 = vmul.f32 %v1057_v54, %v1024_v40  ;;  %v1065_v12 = vmul.f32 %v1061_v57, %v1024_v40  ;;  %v1086_v63 = vmul.f32 %v1061_v57, %v2002_v4  ;;  %v1085_v1 = vmul.f32 %v1057_v54, %v2000_v10 }
 0x471   :  { %v1068_v58 = vcombine.low %v1064_v13, %v1065_v12 }
 0x473   :  { %v1075_v59 = vrot.slane %v1068_v58, %v1970_v43 }
 0x475   :  { %v1082_v61 = vrot.slane %v1075_v59, %v1970_v43 }
 0x477   :  { %v1084_v62 = vsub.f32 %v1052_v60, %v1082_v61 }
 0x479   :  { %v1095_v0 = vrot.slane %v1084_v62, %v1884_v16  ;;  %v1091_v2 = vrot.slane %v1084_v62, %v1878_v14 }
 0x47b   :  { %v1099_v5 = vadd.f32 %v1095_v0, %v1086_v63  ;;  %v1098_v6 = vadd.f32 %v1091_v2, %v1085_v1 }
 0x47d   :  { %v1133_v7 = vpack.c.bf16 %v1099_v5, %v1099_v5  ;;  %v1132_v8 = vpack.c.bf16 %v1098_v6, %v1098_v6 }
 0x47f   :  { %1269 = vmatprep.mubr.bf16.mxu1 %v1133_v7 }
 0x480   :  { %1270 = vmatmul.mubr.bf16.vlgmr.msra.gmra.mrb[4].mxu1 %v1132_v8 }
 0x553   :  { %v1479_v9 = vpop.f32.mrb[4].mxu1 }
 0x554   :  { %v1480_v15 = vpop.f32.mrb[5].mxu1 }
 0x555   :  { %v1481_v17 = vadd.f32 %v1480_v15, %v1479_v9  ;;  %v1482_v4 = vpop.f32.mrb[6].mxu1 }
 0x556   :  { %v1483_v18 = vpop.f32.mrb[7].mxu1 }
 0x557   :  { %v1272_v16 = vadd.f32 %v1481_v17, %v1444_v11 }
 0x559   :  { %v1277_v19 = vmul.f32 0.01, %v1272_v16 }
 0x55b   :  { %v1278_v10 = vmax.f32 %v1272_v16, %v1277_v19 }
 0x55d   :  { %v1279_v20 = vrot.slane %v1278_v10, 4  ;;  %v1285_v21 = vmul.f32 %v1278_v10, %v1278_v10 }
 0x55f   :  { %v1280_v23 = vadd.f32 %v1279_v20, %v1278_v10  ;;  %v1286_v24 = vrot.slane %v1285_v21, 4 }
 0x561   :  { %v1281_v26 = vrot.slane %v1280_v23, 2  ;;  %v1287_v31 = vadd.f32 %v1286_v24, %v1285_v21 }
 0x563   :  { %v1282_v27 = vadd.f32 %v1281_v26, %v1280_v23  ;;  %v1288_v56 = vrot.slane %v1287_v31, 2 }
 0x565   :  { %v1283_v25 = vrot.slane %v1282_v27, 1  ;;  %v1289_v29 = vadd.f32 %v1288_v56, %v1287_v31 }
 0x567   :  { %v1290_v22 = vrot.slane %v1289_v29, 1  ;;  %v1284_v53 = vadd.f32 %v1283_v25, %v1282_v27 }
 0x569   :  { %v1291_v28 = vadd.f32 %v1290_v22, %v1289_v29 }
 0x56b   :  { %v1292_v30 = vsel %vm324_vm1, %v1284_v53, %v1291_v28 }
 0x56c   :  { %1293 = vrot.lane.b32.xlu0 %v1292_v30, %s1739_s2 }
 0x5de   :  { %v1294_v32 = vpop.permute.xlu0 %1293 }
 0x5df   :  { %v1295_v3 = vadd.f32 %v1294_v32, %v1292_v30 }
 0x5e1   :  { %1296 = vrot.lane.b32.xlu1 %v1295_v3, %s1736_s5 }
 0x653   :  { %v1297_v33 = vpop.permute.xlu1 %1296 }
 0x654   :  { %v1298_v55 = vadd.f32 %v1297_v33, %v1295_v3 }
 0x656   :  { %v1299_v34 = vmul.f32 0.03125, %v1298_v55 }
 0x658   :  { %v1300_v35 = vmul.f32 %v1299_v34, %v1299_v34 }
 0x65a   :  { %v1302_v36 = vrot.slane %v1300_v35, 7 }
 0x65c   :  { %v1304_v37 = vsub.f32 %v1299_v34, %v1302_v36 }
 0x65e   :  { %v1306_v38 = vadd.f32 1e-05, %v1304_v37 }
 0x660   :  { %1632 = vrsqrt.f32 %v1306_v38 }
 0x66a   :  { %v1633_v39 = vpop.eup %1632 }
 0x66b   :  { %v1315_v40 = vrot.slane %v1633_v39, %v1970_v43 }
 0x66d   :  { %v1316_v41 = vcombine.high %v1315_v40, %v1315_v40 }
 0x66f   :  { %v1323_v44 = vrot.slane %v1316_v41, %v1970_v43  ;;  %v1462_v43 = vld [vmem:[#allocation2] ss:$0 sm:$0xff] }
 0x671   :  { %v1325_v45 = vmul.f32 %v1323_v44, %v1305_v42 }
 0x673   :  { %v1327_v48 = vmul.f32 %v1325_v45, %v1299_v34  ;;  %v1333_v49 = vrot.slane %v1325_v45, %v1878_v14 }
 0x675   :  { %v1328_v50 = vsub.f32 %v1326_v47, %v1327_v48  ;;  %v1335_v51 = vmul.f32 %v1333_v49, %v1278_v10 }
 0x677   :  { %v1340_v46 = vrot.slane %v1328_v50, %v1878_v14 }
 0x679   :  { %v1342_v54 = vadd.f32 %v1340_v46, %v1335_v51 }
 0x67b   :  { %v1350_v57 = vmul.f32 %v1461_v52, %v1342_v54 }
 0x67d   :  { %1351 = vadd.xlane.f32.xlu0 %v1350_v57 }
 0x70a   :  { %v1352_v13 = vpop.xlane.xlu0 %1351 }
 0x70b   :  { %v1360_v12 = vadd.f32 %v1462_v43, %v1352_v13 }
 0x70d   :  { %1362 = vst.msk [vmem:[%s2079_s15] sm:$0xff] %vm1361_vm4, %v1360_v12 }
 0x70e   :  { %1367 = vsyncpa [#allocation4], 1 }
 0x70f   :  { %1368 = vsyncpa [#allocation6], 1 }
 0x710   :  { %1369 = vsyncpa [#allocation9], 1 }

</bundles_post_ra>
